<compile_context>
chip_gen: v5e
topology: v5e:2x2
jax: 0.10.0
libtpu: 0.0.40
codegen_flags: <defaults>
</compile_context>

<pallas_src>
import functools

import jax
import jax.numpy as jnp
from jax.experimental import pallas as pl
from jax.experimental.pallas import tpu as pltpu

K = 5        # conv kernel size
DIL = 2      # dilation
PAD = 4      # padding (torch: padding=(4,4), dilation=(2,2) -> same spatial size)
BN_EPS = 1e-5


def _dense_block_kernel(x_ref, scale_ref, shift_ref, w_ref, b_ref, *rest,
                        bn, H, WPCP, WG, n_out, drop_out):
    """One grid step = `bn` batch elements.

    x_ref     : (bn, HP, WPCP)       zero-padded input, (W, C) flattened onto lanes
    scale_ref : (HP, WPCP)           folded BN scale (zero on padded border / lanes)
    shift_ref : (HP, WPCP)           folded BN shift (zero on padded border / lanes)
    w_ref     : (K*WPCP, WG) bf16    kh/kw/channel-fused conv weight
    b_ref     : (1, WG)              conv bias tiled over W
    mask_ref  : (n_out, bn, H, WG)   inverted-dropout multipliers (only if drop_out)
    o_ref     : (n_out, bn, H, WG)   lane-dense conv output(s)
    """
    if drop_out:
        mask_ref, o_ref = rest
    else:
        (o_ref,) = rest

    # BatchNorm (inference) + ReLU + exact zero padding fused into one FMA + max,
    # then cast to bf16 for the MXU.
    a = jnp.maximum(x_ref[...] * scale_ref[...] + shift_ref[...], 0.0)
    a = a.astype(jnp.bfloat16)                                     # (bn, HP, WPCP)

    # Dilated 5x5 conv as ONE MXU matmul: lane-concat the K row-shifted slabs into a
    # (bn*H, K*WPCP) LHS against the kh/kw/channel-fused (K*WPCP, WG) weight.
    slabs = [a[:, kh * DIL:kh * DIL + H, :] for kh in range(K)]
    lhs = jnp.concatenate(slabs, axis=-1).reshape(bn * H, K * WPCP)
    acc = jnp.dot(lhs, w_ref[...], preferred_element_type=jnp.float32)
    conv = (acc + b_ref[...]).reshape(bn, H, WG)                   # (bn, H, WG) f32

    if drop_out:
        for l in range(n_out):
            o_ref[l] = (conv * mask_ref[l]).astype(o_ref.dtype)
    else:
        o_ref[0] = conv.astype(o_ref.dtype)          # n_out == 1: layers identical


def dense_block_forward(x_nchw, params, nb_layers, drop_out=False, seed=0,
                        drop_p=0.5, batch_block=None):
    """Pallas implementation of Dense_Block.forward (BN in inference mode).

    x_nchw: (N, C, H, W) float32 -> (N, C + nb_layers * G, H, W) float32.
    """
    gamma = params["gamma"].astype(jnp.float32)
    beta = params["beta"].astype(jnp.float32)
    mean = params["running_mean"].astype(jnp.float32)
    var = params["running_var"].astype(jnp.float32)
    weight = params["weight"].astype(jnp.float32)      # (G, C, K, K) OIHW like torch
    bias = params["bias"].astype(jnp.float32)          # (G,)

    N, C, H, W = x_nchw.shape
    G = weight.shape[0]
    HP, WP = H + 2 * PAD, W + 2 * PAD
    WPC, WG = WP * C, W * G
    WPCP = ((WPC + 127) // 128) * 128                  # lane-pad the contraction dim

    # ---- fold BN running stats + affine into per-channel scale / shift ------------
    inv_std = 1.0 / jnp.sqrt(var + BN_EPS)
    scale_c = gamma * inv_std
    shift_c = beta - mean * scale_c

    # 2-D scale/shift maps, zero on the padded border AND the lane padding, so that
    # relu(x*scale + shift) of the zero-padded input equals torch's
    # "zero-pad after BN+ReLU" with no in-kernel masking.
    col_scale = jnp.concatenate(
        [jnp.zeros(PAD * C), jnp.tile(scale_c, W), jnp.zeros(PAD * C + WPCP - WPC)])
    col_shift = jnp.concatenate(
        [jnp.zeros(PAD * C), jnp.tile(shift_c, W), jnp.zeros(PAD * C + WPCP - WPC)])
    row_mask = jnp.concatenate([jnp.zeros(PAD), jnp.ones(H), jnp.zeros(PAD)])
    scale2d = (row_mask[:, None] * col_scale[None, :]).astype(jnp.float32)  # (HP, WPCP)
    shift2d = (row_mask[:, None] * col_shift[None, :]).astype(jnp.float32)  # (HP, WPCP)

    # ---- fuse the (kh, kw, c) taps into a single (K*WPCP, W*G) bf16 matmul RHS ----
    # w_rows[kh, wp*C + c, v*G + g] = weight[g, c, kh, kw]   iff   wp == v + DIL*kw
    wt = jnp.transpose(weight, (2, 3, 1, 0))                               # (Kh, Kw, C, G)
    sel = (jnp.arange(WP)[None, :, None] ==
           (jnp.arange(W)[None, None, :] + DIL * jnp.arange(K)[:, None, None]))
    sel = sel.astype(jnp.float32)                                          # (Kw, WP, W)
    w_rows = jnp.einsum("kpv,hkcg->hpcvg", sel, wt).reshape(K, WPC, WG)
    w_fused = jnp.pad(w_rows, ((0, 0), (0, WPCP - WPC), (0, 0)))
    w_fused = w_fused.reshape(K * WPCP, WG).astype(jnp.bfloat16)
    b_row = jnp.tile(bias, W).reshape(1, WG).astype(jnp.float32)

    # ---- input: NCHW -> zero-padded NHWC, flattened + lane-padded to (N, HP, WPCP) -
    x_nhwc = jnp.transpose(x_nchw, (0, 2, 3, 1)).astype(jnp.float32)
    x_flat = jnp.pad(x_nhwc, ((0, 0), (PAD, PAD), (PAD, PAD), (0, 0))).reshape(N, HP, WPC)
    x_flat = jnp.pad(x_flat, ((0, 0), (0, 0), (0, WPCP - WPC)))

    # Without dropout every layer is identical -> single conv per element, replicated
    # in the wrapper.  With dropout: one output block per layer, conv computed once.
    n_out = nb_layers if drop_out else 1

    # Batch blocking: `bn` elements per grid step stack rows into the matmul M dim.
    # Default keeps >= 2 grid steps so both v7x TensorCores stay busy.
    if batch_block is None:
        batch_block = max(1, N // 2)
    bn = max(1, min(int(batch_block), N))
    while N % bn:
        bn -= 1
    grid = (N // bn,)

    kernel = functools.partial(_dense_block_kernel, bn=bn, H=H, WPCP=WPCP, WG=WG,
                               n_out=n_out, drop_out=drop_out)

    in_specs = [
        pl.BlockSpec((bn, HP, WPCP), lambda n: (n, 0, 0)),
        pl.BlockSpec((HP, WPCP), lambda n: (0, 0)),
        pl.BlockSpec((HP, WPCP), lambda n: (0, 0)),
        pl.BlockSpec((K * WPCP, WG), lambda n: (0, 0)),
        pl.BlockSpec((1, WG), lambda n: (0, 0)),
    ]
    operands = [x_flat, scale2d, shift2d, w_fused, b_row]

    if drop_out:
        # Inverted dropout: per-layer independent masks drawn in the wrapper with a
        # runtime seed (no recompile per seed; works on TPU and in interpret mode).
        # TODO(synk): RNG stream cannot match torch.nn.Dropout's bit stream.
        key = jax.random.PRNGKey(seed)
        keep = jax.random.bernoulli(key, 1.0 - drop_p, (n_out, N, H, WG))
        mask = keep.astype(jnp.float32) * (1.0 / (1.0 - drop_p))
        in_specs.append(pl.BlockSpec((n_out, bn, H, WG), lambda n: (0, n, 0, 0)))
        operands.append(mask)

    flops = 2 * N * H * (K * WPCP) * WG + 3 * N * HP * WPCP
    bytes_accessed = (int(x_flat.size) + 2 * int(scale2d.size) + int(b_row.size)) * 4 \
        + int(w_fused.size) * 2 \
        + N * n_out * H * WG * 4 * (2 if drop_out else 1)

    conv = pl.pallas_call(
        kernel,
        out_shape=jax.ShapeDtypeStruct((n_out, N, H, WG), jnp.float32),
        grid=grid,
        in_specs=in_specs,
        out_specs=pl.BlockSpec((n_out, bn, H, WG), lambda n: (0, n, 0, 0)),
        compiler_params=pltpu.CompilerParams(dimension_semantics=("parallel",)),
        cost_estimate=pl.CostEstimate(flops=int(flops), transcendentals=0,
                                      bytes_accessed=int(bytes_accessed)),
    )(*operands)

    # (n_out, N, H, W*G) -> per-layer NCHW, then torch.cat([x, layer_0, ...], dim=1).
    conv_nchw = jnp.transpose(conv.reshape(n_out, N, H, W, G), (1, 0, 4, 2, 3))
    if drop_out:
        pieces = [x_nchw] + [conv_nchw[:, l] for l in range(nb_layers)]
    else:
        pieces = [x_nchw] + [conv_nchw[:, 0]] * nb_layers
    return jnp.concatenate(pieces, axis=1)


def dense_block_reference(x_nchw, params, nb_layers):
    """Pure-JAX reference (inference-mode BN), for correctness checking."""
    gamma = params["gamma"][None, :, None, None]
    beta = params["beta"][None, :, None, None]
    mean = params["running_mean"][None, :, None, None]
    var = params["running_var"][None, :, None, None]
    a = (x_nchw - mean) / jnp.sqrt(var + BN_EPS) * gamma + beta
    a = jnp.maximum(a, 0.0)
    conv = jax.lax.conv_general_dilated(
        a, params["weight"],
        window_strides=(1, 1),
        padding=((PAD, PAD), (PAD, PAD)),
        rhs_dilation=(DIL, DIL),
        dimension_numbers=("NCHW", "OIHW", "NCHW"))
    conv = conv + params["bias"][None, :, None, None]
    return jnp.concatenate([x_nchw] + [conv] * nb_layers, axis=1)


if __name__ == "__main__":
    N, C, H, W = 2, 4, 16, 16      # small NCHW input, as in the torch module
    G, NB_LAYERS = 8, 3            # growth_rate, nb_layers

    key = jax.random.PRNGKey(0)
    ks = jax.random.split(key, 7)
    x = jax.random.normal(ks[0], (N, C, H, W), jnp.float32)
    params = {
        "gamma": jax.random.uniform(ks[1], (C,), jnp.float32, 0.5, 1.5),
        "beta": 0.1 * jax.random.normal(ks[2], (C,), jnp.float32),
        "running_mean": 0.1 * jax.random.normal(ks[3], (C,), jnp.float32),
        "running_var": jax.random.uniform(ks[4], (C,), jnp.float32, 0.5, 1.5),
        "weight": 0.1 * jax.random.normal(ks[5], (G, C, K, K), jnp.float32),
        "bias": 0.1 * jax.random.normal(ks[6], (G,), jnp.float32),
    }

    # No-dropout path: check against the dense-conv reference (bf16 MXU operands
    # with f32 accumulation -> loosened tolerance).
    out = dense_block_forward(x, params, nb_layers=NB_LAYERS, drop_out=False)
    out = jax.block_until_ready(out)
    assert out.shape == (N, C + NB_LAYERS * G, H, W), out.shape

    ref = dense_block_reference(x, params, NB_LAYERS)
    max_err = float(jnp.max(jnp.abs(out - ref)))
    assert jnp.allclose(out, ref, atol=5e-2, rtol=5e-2), f"max abs err = {max_err}"

    # Dropout path: independent p=0.5 masks per layer; kept values are 2x the conv.
    out_d = jax.block_until_ready(
        dense_block_forward(x, params, nb_layers=NB_LAYERS, drop_out=True, seed=1234))
    assert out_d.shape == out.shape, out_d.shape
    conv_nd = out[:, C:]       # no-dropout conv, replicated over layers
    conv_d = out_d[:, C:]
    zero_frac = float(jnp.mean(conv_d == 0.0))
    assert 0.35 < zero_frac < 0.65, zero_frac
    resid = jnp.where(conv_d == 0.0, 0.0, conv_d - 2.0 * conv_nd)
    assert jnp.allclose(resid, 0.0, atol=5e-4), float(jnp.max(jnp.abs(resid)))

    print("KERNEL_OK")
</pallas_src>

<mosaic_0001>
module attributes {stable_mosaic.version = 11 : i64} {
  func.func @_dense_block_kernel(%arg0: i32, %arg1: memref<1x24x128xf32, #tpu.memory_space<vmem>>, %arg2: memref<24x128xf32, #tpu.memory_space<vmem>>, %arg3: memref<24x128xf32, #tpu.memory_space<vmem>>, %arg4: memref<640x128xbf16, #tpu.memory_space<vmem>>, %arg5: memref<1x128xf32, #tpu.memory_space<vmem>>, %arg6: memref<1x1x16x128xf32, #tpu.memory_space<vmem>>) attributes {dimension_semantics = [#tpu.dimension_semantics<parallel>], iteration_bounds = array<i64: 2>, scalar_prefetch = 0 : i64, scratch_operands = 0 : i64, tpu.core_type = #tpu.core_type<tc>, window_params = [{transform_indices = @transform_0, window_bounds = array<i64: 1, 24, 128>}, {pipeline_mode = #tpu.pipeline_mode<synchronous>, transform_indices = @transform_1, window_bounds = array<i64: 24, 128>}, {pipeline_mode = #tpu.pipeline_mode<synchronous>, transform_indices = @transform_2, window_bounds = array<i64: 24, 128>}, {pipeline_mode = #tpu.pipeline_mode<synchronous>, transform_indices = @transform_3, window_bounds = array<i64: 640, 128>}, {pipeline_mode = #tpu.pipeline_mode<synchronous>, transform_indices = @transform_4, window_bounds = array<i64: 1, 128>}, {transform_indices = @transform_5, window_bounds = array<i64: 1, 1, 16, 128>}]} {
    %c0 = arith.constant 0 : index
    %c0_0 = arith.constant 0 : index
    %c0_1 = arith.constant 0 : index
    %0 = vector.load %arg1[%c0, %c0_0, %c0_1] : memref<1x24x128xf32, #tpu.memory_space<vmem>>, vector<1x24x128xf32>
    %c0_2 = arith.constant 0 : index
    %c0_3 = arith.constant 0 : index
    %1 = vector.load %arg2[%c0_2, %c0_3] : memref<24x128xf32, #tpu.memory_space<vmem>>, vector<24x128xf32>
    %2 = vector.shape_cast %1 : vector<24x128xf32> to vector<1x24x128xf32>
    %3 = arith.mulf %0, %2 : vector<1x24x128xf32>
    %c0_4 = arith.constant 0 : index
    %c0_5 = arith.constant 0 : index
    %4 = vector.load %arg3[%c0_4, %c0_5] : memref<24x128xf32, #tpu.memory_space<vmem>>, vector<24x128xf32>
    %5 = vector.shape_cast %4 : vector<24x128xf32> to vector<1x24x128xf32>
    %6 = arith.addf %3, %5 : vector<1x24x128xf32>
    %cst = arith.constant 0.000000e+00 : f32
    %7 = vector.broadcast %cst : f32 to vector<1x24x128xf32>
    %8 = arith.maximumf %6, %7 : vector<1x24x128xf32>
    %9 = arith.truncf %8 : vector<1x24x128xf32> to vector<1x24x128xbf16>
    %10 = vector.extract_strided_slice %9 {offsets = [0, 0, 0], sizes = [1, 16, 128], strides = [1, 1, 1]} : vector<1x24x128xbf16> to vector<1x16x128xbf16>
    %11 = vector.extract_strided_slice %9 {offsets = [0, 2, 0], sizes = [1, 16, 128], strides = [1, 1, 1]} : vector<1x24x128xbf16> to vector<1x16x128xbf16>
    %12 = vector.extract_strided_slice %9 {offsets = [0, 4, 0], sizes = [1, 16, 128], strides = [1, 1, 1]} : vector<1x24x128xbf16> to vector<1x16x128xbf16>
    %13 = vector.extract_strided_slice %9 {offsets = [0, 6, 0], sizes = [1, 16, 128], strides = [1, 1, 1]} : vector<1x24x128xbf16> to vector<1x16x128xbf16>
    %14 = vector.extract_strided_slice %9 {offsets = [0, 8, 0], sizes = [1, 16, 128], strides = [1, 1, 1]} : vector<1x24x128xbf16> to vector<1x16x128xbf16>
    %15 = tpu.concatenate %10, %11, %12, %13, %14 in 2 : vector<1x16x128xbf16>, vector<1x16x128xbf16>, vector<1x16x128xbf16>, vector<1x16x128xbf16>, vector<1x16x128xbf16> -> vector<1x16x640xbf16>
    %16 = vector.shape_cast %15 : vector<1x16x640xbf16> to vector<16x640xbf16>
    %c0_6 = arith.constant 0 : index
    %c0_7 = arith.constant 0 : index
    %17 = vector.load %arg4[%c0_6, %c0_7] : memref<640x128xbf16, #tpu.memory_space<vmem>>, vector<640x128xbf16>
    %cst_8 = arith.constant dense<0.000000e+00> : vector<16x128xf32>
    %18 = tpu.matmul %16, %17, %cst_8 {dimension_numbers = #tpu.dot_dimension_numbers<[1], [0], [0], [1], [0, 0, 1, 1], [], []>} : vector<16x640xbf16>, vector<640x128xbf16>, vector<16x128xf32> -> vector<16x128xf32>
    %c0_9 = arith.constant 0 : index
    %c0_10 = arith.constant 0 : index
    %19 = vector.load %arg5[%c0_9, %c0_10] : memref<1x128xf32, #tpu.memory_space<vmem>>, vector<1x128xf32>
    %20 = vector.broadcast %19 : vector<1x128xf32> to vector<16x128xf32>
    %21 = arith.addf %18, %20 : vector<16x128xf32>
    %22 = vector.shape_cast %21 : vector<16x128xf32> to vector<1x16x128xf32>
    %c0_11 = arith.constant 0 : index
    %c0_12 = arith.constant 0 : index
    %c0_13 = arith.constant 0 : index
    %c0_14 = arith.constant 0 : index
    %23 = vector.load %arg6[%c0_11, %c0_12, %c0_13, %c0_14] : memref<1x1x16x128xf32, #tpu.memory_space<vmem>>, vector<1x1x16x128xf32>
    %24 = vector.shape_cast %23 : vector<1x1x16x128xf32> to vector<1x16x128xf32>
    %25 = vector.shape_cast %22 : vector<1x16x128xf32> to vector<1x1x16x128xf32>
    tpu.vector_store %arg6[%c0_11, %c0_12, %c0_13, %c0_14], %25 {strides = array<i32>} : memref<1x1x16x128xf32, #tpu.memory_space<vmem>>, vector<1x1x16x128xf32>,
    return
  }
  func.func @transform_0(%arg0: i32) -> (i32, i32, i32) {
    %c0_i32 = arith.constant 0 : i32
    %c0_i32_0 = arith.constant 0 : i32
    %c0_i32_1 = arith.constant 0 : i32
    return %arg0, %c0_i32, %c0_i32_0 : i32, i32, i32
  }
  func.func @transform_1(%arg0: i32) -> (i32, i32) {
    %c0_i32 = arith.constant 0 : i32
    %c0_i32_0 = arith.constant 0 : i32
    %c0_i32_1 = arith.constant 0 : i32
    return %c0_i32, %c0_i32_0 : i32, i32
  }
  func.func @transform_2(%arg0: i32) -> (i32, i32) {
    %c0_i32 = arith.constant 0 : i32
    %c0_i32_0 = arith.constant 0 : i32
    %c0_i32_1 = arith.constant 0 : i32
    return %c0_i32, %c0_i32_0 : i32, i32
  }
  func.func @transform_3(%arg0: i32) -> (i32, i32) {
    %c0_i32 = arith.constant 0 : i32
    %c0_i32_0 = arith.constant 0 : i32
    %c0_i32_1 = arith.constant 0 : i32
    return %c0_i32, %c0_i32_0 : i32, i32
  }
  func.func @transform_4(%arg0: i32) -> (i32, i32) {
    %c0_i32 = arith.constant 0 : i32
    %c0_i32_0 = arith.constant 0 : i32
    %c0_i32_1 = arith.constant 0 : i32
    return %c0_i32, %c0_i32_0 : i32, i32
  }
  func.func @transform_5(%arg0: i32) -> (i32, i32, i32, i32) {
    %c0_i32 = arith.constant 0 : i32
    %c0_i32_0 = arith.constant 0 : i32
    %c0_i32_1 = arith.constant 0 : i32
    %c0_i32_2 = arith.constant 0 : i32
    return %c0_i32, %arg0, %c0_i32_0, %c0_i32_1 : i32, i32, i32, i32
  }
}

</mosaic_0001>

<bundles_post_ra>
// kernel: tpu_custom_call.1
= control target key start
LH: loop header
LB: loop body
LE: loop exit
PB: predicated region body
PF: predicated region fallthrough
CT: control target
= control target key end

     0   :  { %s1572_s0 = inlined_call_operand.hbm [shape: f32[2,24,128], index: 0, kind: input, shape index: {}]   ;;  %s1573_s1 = inlined_call_operand.hbm [shape: f32[24,128], index: 1, kind: input, shape index: {}]   ;;  %s1574_s2 = inlined_call_operand.hbm [shape: f32[24,128], index: 2, kind: input, shape index: {}]   ;;  %s1575_s3 = inlined_call_operand.hbm [shape: bf16[640,128], index: 3, kind: input, shape index: {}]   ;;  %s1576_s4 = inlined_call_operand.vmem [shape: f32[1,128], index: 4, kind: input, shape index: {}]   ;;  %s1577_s5 = inlined_call_operand.hbm [shape: f32[1,2,16,128], index: 5, kind: output, shape index: {}]  }
   0x1   :  { %1580 = sst [smem:[#allocation15_spill]] %s1573_s1 }
   0x2   :  { %10 = vsyncpa [#allocation3], 0 }
   0x3   :  { %12 = vsyncpa [#allocation3 + $0x1], 0 }
   0x4   :  { %13 = vsyncpa [#allocation6], 0 }
   0x5   :  { %14 = vsyncpa [#allocation9], 0 }
   0x6   :  { %15 = vsyncpa [#allocation4], 0 }
   0x7   :  { %17 = vsyncpa [#allocation4 + $0x1], 0  ;;  %s1396_s18 = smov 0   ;;  %s1398_s19 = smov 0  }
   0x8   :  { %s1400_s20 = smov 0   ;;  %s1402_s21 = smov 0  }
   0x9 LB: > { %s1417_s22 = sadd.s32 4294967295, %s1355_s21   ;;  %s856_s23 = sadd.s32 4294967294, %s1355_s21   ;;  %s1355_s21 = sphi %s1402_s21, %s1594_s21   ;;  %s1351_s20 = sphi %s1400_s20, %s1593_s20   ;;  %s1347_s19 = sphi %s1398_s19, %s1592_s19   ;;  %s1343_s18 = sphi %s1396_s18, %s1591_s18  }
   0xa   : > { %p43_p0 = scmp.ne.s32.totalorder %s1347_s19, %s1343_s18  ;;  %p44_p1 = scmp.eq.s32.totalorder %s1417_s22, 0 }
   0xb   : > { %p151_p2 = scmp.eq.s32.totalorder %s1417_s22, 1  ;;  %p157_p3 = scmp.eq.s32.totalorder %s856_s23, 1 }
   0xc   : > { %p1426_p4 = por %p44_p1, %p43_p0  ;;  %p857_p5 = scmp.ge.s32.totalorder %s1355_s21, 1 }
   0xd   : > { %p1431_p6 = por %p157_p3, %p43_p0  ;;  %p164_p7 = scmp.lt.s32.totalorder %s1355_s21, 3 }
   0xe   : > { %s1583_s1 = sld [smem:[#allocation15_spill]]  ;;  %s1357_s30 = smov [#allocation5]  }
   0xf   : > { %p1439_p8 = pnand %p857_p5, %p164_p7  ;;  %s177_s6 = sshll.u32 %s1357_s30, 4  ;;  %s178_s6 = int_to_ptr.vmem [resolvable:$true] %s177_s6 }
  0x10   : > { %s189_s10 = sshll.u32 %s1574_s2, 4  ;;  %s1578_s11 = smov 128   ;;  %s190_s10 = int_to_ptr.hbm [resolvable:$true] %s189_s10 }
  0x11   : > { %p1093_p9 = pneg %p1439_p8  ;;  %s1579_s12 = smov 8  }
  0x12   : > { %s1360_s13 = smov [#allocation7]   ;;  %s203_s17 = sshll.u32 %s1575_s3, 4  ;;  %s204_s17 = int_to_ptr.hbm [resolvable:$true] %s203_s17 }
  0x13   : > { %p1447_p10 = pnand %p1093_p9, %p44_p1  ;;  %s191_s14 = sshll.u32 %s1360_s13, 4  ;;  %s192_s14 = int_to_ptr.vmem [resolvable:$true] %s191_s14 }
  0x14   : > { %s175_s28 = sshll.u32 %s1583_s1, 4  ;;  %s1361_s23 = smov [#allocation8]   ;;  %s176_s28 = int_to_ptr.hbm [resolvable:$true] %s175_s28 }
  0x15   : > { %1096 = dma.hbm_to_vmem [thread:$0]  (!%p1447_p10), %s176_s28, 384, %s178_s6, [#allocation6], %s1578_s11, %s1578_s11, %s1579_s12  }
  0x16   : > { %1099 = dma.hbm_to_vmem [thread:$0]  (!%p1447_p10), %s190_s10, 384, %s192_s14, [#allocation6], %s1578_s11, %s1578_s11, %s1579_s12  }
  0x17   : > { %s205_s26 = sshll.u32 %s1361_s23, 4  ;;  %s1362_s27 = smov 64   ;;  %s206_s26 = int_to_ptr.vmem [resolvable:$true] %s205_s26 }
  0x18   : > { %s1363_s28 = smov 4   ;;  %s1471_s30 = sadd.s32 1, %s1355_s21  }
  0x19   : > { %1102 = dma.hbm_to_vmem [thread:$0]  (!%p1447_p10), %s204_s17, 5120, %s206_s26, [#allocation9], %s1362_s27, %s1362_s27, %s1363_s28  }
  0x1a   : > { %s27_s6 = ssub.s32 %s1355_s21, %s1471_s30  ;;  %s30_s8 = sadd.s32 1, %s1351_s20 }
  0x1b   : > { %p28_p12 = scmp.eq.s32.totalorder %s27_s6, 0  ;;  %p37_p13 = scmp.ne.s32.totalorder %s1351_s20, %s1347_s19 }
  0x1c   : > { %p38_p0 = scmp.eq.s32.totalorder %s1355_s21, 0  ;;  %p1114_p3 = scmp.lt.s32.totalorder %s1355_s21, 2 }
  0x1d   : > { %s1481_s9 = scalar_select %p28_p12, %s1351_s20, %s30_s8  }
  0x1e   : > { %p39_p5 = por %p38_p0, %p37_p13  ;;  %p1485_p7 = por %p151_p2, %p37_p13 }
  0x1f   : > { %s222_s13 = sand.u32 1, %s1351_s20   ;;  %s1075_s7 = smul.u32 24, %s1355_s21 }
  0x20   : > { %s1074_s14 = smul.u32 24, %s222_s13  ;;  %p1494_p9 = pnand %p1114_p3, %p39_p5 }
  0x21   : > { %s231_s17 = scalar_lea.hbm %s1572_s0, %s1075_s7  ;;  %s223_s6 = scalar_lea.sflag [#allocation3], %s222_s13 }
  0x22   : > { %s232_s26 = sshll.u32 %s231_s17, 4  ;;  %s226_s27 = scalar_lea.vmem [#allocation2], %s1074_s14  ;;  %s233_s26 = int_to_ptr.hbm [resolvable:$true] %s232_s26 }
  0x23   : > { %s234_s28 = sshll.u32 %s226_s27, 4  ;;  %s1251_s8 = sshra.s32 %s233_s26, 4  ;;  %s235_s28 = int_to_ptr.vmem [resolvable:$true] %s234_s28  ;;  %s1252_s8 = int_to_ptr.hbm [resolvable:$true] %s1251_s8 }
  0x24   : > { %s1253_s11 = scalar_lea.hbm %s1252_s8, 24  ;;  %p1255_p10 = pneg %p1494_p9 }
  0x25   : > { %p1254_p2 = scmp.ne.s32.totalorder %s1252_s8, %s1253_s11  ;;  %s1258_s16 = scalar_lea.hbm %s1572_s0, 48 }
  0x26   : > { %p1259_p0 = scmp.lt.s32.totalorder %s1252_s8, %s1572_s0  ;;  %p1260_p3 = scmp.lt.s32.totalorder %s1258_s16, %s1253_s11 }
  0x27   : > { %p1256_p12 = pnand %p1255_p10, %p1254_p2 }
  0x28   : > { %p1261_p5 = por %p1260_p3, %p1259_p0 }
  0x29   : > { %p1257_p13 = pneg %p1256_p12 }
  0x2b   : > { %p1262_p11 = pnand %p1261_p5, %p1257_p13 }
  0x2d   : > { %1265 = shalt.err (!%p1262_p11)
}
  0x2e   : > { %s1588_s13 = smov 8   ;;  %s1589_s14 = smov 128  }
  0x2f   : > { %1106 = dma.hbm_to_vmem [thread:$0]  (!%p1494_p9), %s233_s26, 384, %s235_s28, %s223_s6, %s1589_s14, %s1589_s14, %s1588_s13  }
  0x30   : > { %246 = sbr.rel (%p1439_p8) target bundleno = 262 (0x106), region = 40  ;;  %s1514_s17 = sand.u32 (!%p1439_p8), 1, %s1347_s19  }
  0x31   : > { %s1076_s1 = smul.u32 (!%p1439_p8), 24, %s1514_s17  ;;  %s249_s11 = scalar_lea.sflag (!%p1439_p8), [#allocation3], %s1514_s17 }
  0x33   : > { %s1518_s12 = scalar_lea.vmem (!%p1439_p8), [#allocation2], %s1076_s1 }
  0x35   : > { %1326 = dma.done.wait (%p1426_p4), %s249_s11, 384  }
  0x36   : > { %1328 = vsyncadd (%p1426_p4), %s249_s11, 4294966912 }
  0x37   : > { %1330 = dma.done.wait (%p44_p1), [#allocation6], 768  }
  0x38   : > { %1332 = vsyncadd (%p44_p1), [#allocation6], 4294966528 }
  0x39   : > { %1334 = dma.done.wait (%p44_p1), [#allocation9], 5120  }
  0x3a   : > { %1336 = vsyncadd (%p44_p1), [#allocation9], 4294962176  ;;  %v1040_v0 = vld [vmem:[#allocation8 + $0x38] sm:$0xff]  ;;  %v1039_v4 = vld [vmem:[#allocation8 + $0x30] sm:$0xff]  ;;  %vm330_vm0 = vcmask 1045504   ;;  %vm335_vm1 = vcmask 1044480  }
  0x3b   : > { %v1056_v1 = vld [vmem:[#allocation8 + $0xb8] sm:$0xff]  ;;  %666 = vmatpush.bf16.msra.mxu0 %v1040_v0  ;;  %v1055_v5 = vld [vmem:[#allocation8 + $0xb0] sm:$0xff]  ;;  %v1038_v8 = vld [vmem:[#allocation8 + $0x28] sm:$0xff]  ;;  %vm325_vm2 = vcmask 1046528   ;;  %s867_s23 = sshll.u32 %s1514_s17, 4  ;;  %s1073_s26 = sshll.u32 %s1417_s22, 4 }
  0x3c   : > { %v1064_v2 = vld [vmem:[#allocation8 + $0xf8] sm:$0xff]  ;;  %694 = vmatpush.bf16.msra.mxu2 %v1056_v1  ;;  %v1063_v6 = vld [vmem:[#allocation8 + $0xf0] sm:$0xff]  ;;  %v1054_v9 = vld [vmem:[#allocation8 + $0xa8] sm:$0xff]  ;;  %s750_s6 = scalar_lea.hbm %s1577_s5, %s1073_s26  ;;  %s294_s8 = scalar_lea.vmem [#allocation10], %s867_s23 }
  0x3d   : > { %v1048_v3 = vld [vmem:[#allocation8 + $0x78] sm:$0xff]  ;;  %708 = vmatpush.bf16.msra.mxu3 %v1064_v2  ;;  %v1047_v7 = vld [vmem:[#allocation8 + $0x70] sm:$0xff]  ;;  %v1062_v10 = vld [vmem:[#allocation8 + $0xe8] sm:$0xff]  ;;  %s751_s7 = sshll.u32 %s294_s8, 4  ;;  %s753_s15 = sshll.u32 %s750_s6, 4  ;;  %s752_s7 = int_to_ptr.vmem [resolvable:$true] %s751_s7  ;;  %s754_s15 = int_to_ptr.hbm [resolvable:$true] %s753_s15 }
  0x3e   : > { %680 = vmatpush.bf16.msra.mxu1 %v1048_v3  ;;  %v1046_v11 = vld [vmem:[#allocation8 + $0x68] sm:$0xff]  ;;  %v1037_v12 = vld [vmem:[#allocation8 + $0x20] sm:$0xff]  ;;  %v298_v19 = vld [vmem:[#allocation5] sm:$0xff]  ;;  %s739_s22 = scalar_lea.sflag [#allocation4], %s1514_s17  ;;  %s1295_s16 = sshra.s32 %s754_s15, 4  ;;  %s1296_s16 = int_to_ptr.hbm [resolvable:$true] %s1295_s16 }
  0x3f   : > { %667 = vmatpush.bf16.msra.mxu0 %v1039_v4  ;;  %v1053_v13 = vld [vmem:[#allocation8 + $0xa0] sm:$0xff]  ;;  %v297_v18 = vld [vmem:[%s1518_s12 + $0x10] sm:$0xff]  ;;  %v299_v20 = vld [vmem:[#allocation5 + $0x8] sm:$0xff]  ;;  %s1297_s13 = scalar_lea.hbm %s1296_s16, 16  ;;  %s1301_s11 = scalar_lea.hbm %s1577_s5, 32 }
  0x40   : > { %695 = vmatpush.bf16.msra.mxu2 %v1055_v5  ;;  %v1061_v14 = vld [vmem:[#allocation8 + $0xe0] sm:$0xff]  ;;  %v304_v25 = vld [vmem:[#allocation7] sm:$0xff]  ;;  %v305_v26 = vld [vmem:[#allocation7 + $0x8] sm:$0xff]  ;;  %p1298_p1 = scmp.ne.s32.totalorder %s1296_s16, %s1297_s13  ;;  %p1302_p11 = scmp.lt.s32.totalorder %s1296_s16, %s1577_s5 }
  0x41   : > { %709 = vmatpush.bf16.msra.mxu3 %v1063_v6  ;;  %v1045_v15 = vld [vmem:[#allocation8 + $0x60] sm:$0xff]  ;;  %v306_v27 = vld [vmem:[#allocation7 + $0x10] sm:$0xff]  ;;  %v1035_v38 = vld [vmem:[#allocation8 + $0x10] sm:$0xff]  ;;  %p1303_p9 = scmp.lt.s32.totalorder %s1301_s11, %s1297_s13 }
  0x42   : > { %681 = vmatpush.bf16.msra.mxu1 %v1047_v7  ;;  %v295_v16 = vld [vmem:[%s1518_s12] sm:$0xff]  ;;  %v296_v17 = vld [vmem:[%s1518_s12 + $0x8] sm:$0xff]  ;;  %v1051_v39 = vld [vmem:[#allocation8 + $0x90] sm:$0xff]  ;;  %p1299_p4 = pnand %p1298_p1, %p1485_p7 }
  0x43   : > { %668 = vmatpush.bf16.msra.mxu0 %v1038_v8  ;;  %v300_v21 = vld [vmem:[#allocation5 + $0x10] sm:$0xff]  ;;  %v301_v22 = vmul.f32 %v298_v19, %v295_v16  ;;  %v302_v23 = vmul.f32 %v299_v20, %v296_v17  ;;  %v1036_v28 = vld [vmem:[#allocation8 + $0x18] sm:$0xff]  ;;  %v1059_v40 = vld [vmem:[#allocation8 + $0xd0] sm:$0xff]  ;;  %p1304_p2 = por %p1303_p9, %p1302_p11 }
  0x44   : > { %696 = vmatpush.bf16.msra.mxu2 %v1054_v9  ;;  %v303_v24 = vmul.f32 %v300_v21, %v297_v18  ;;  %v1052_v29 = vld [vmem:[#allocation8 + $0x98] sm:$0xff]  ;;  %v1043_v41 = vld [vmem:[#allocation8 + $0x50] sm:$0xff]  ;;  %v1034_v48 = vld [vmem:[#allocation8 + $0x8] sm:$0xff]  ;;  %p1300_p8 = pneg %p1299_p4 }
  0x45   : > { %710 = vmatpush.bf16.msra.mxu3 %v1062_v10  ;;  %v1060_v30 = vld [vmem:[#allocation8 + $0xd8] sm:$0xff]  ;;  %v307_v32 = vadd.f32 %v304_v25, %v301_v22  ;;  %v308_v33 = vadd.f32 %v305_v26, %v302_v23  ;;  %v1050_v49 = vld [vmem:[#allocation8 + $0x88] sm:$0xff]  ;;  %v1033_v54 = vld [vmem:[#allocation8] sm:$0xff] }
  0x46   : > { %682 = vmatpush.bf16.msra.mxu1 %v1046_v11  ;;  %v1044_v31 = vld [vmem:[#allocation8 + $0x58] sm:$0xff]  ;;  %v309_v34 = vadd.f32 %v306_v27, %v303_v24  ;;  %v1058_v50 = vld [vmem:[#allocation8 + $0xc8] sm:$0xff]  ;;  %v1049_v55 = vld [vmem:[#allocation8 + $0x80] sm:$0xff]  ;;  %p1305_p10 = pnand %p1304_p2, %p1300_p8 }
  0x47   : > { %669 = vmatpush.bf16.msra.mxu0 %v1037_v12  ;;  %v310_v35 = vmax.f32 %v307_v32, 0.0  ;;  %v311_v36 = vmax.f32 %v308_v33, 0.0  ;;  %v1042_v51 = vld [vmem:[#allocation8 + $0x48] sm:$0xff]  ;;  %v1072_v58 = vld [vmem:[#allocation8 + $0x138] sm:$0xff]  ;;  %v1057_v59 = vld [vmem:[#allocation8 + $0xc0] sm:$0xff] }
  0x48   : > { %697 = vmatpush.bf16.msra.mxu2 %v1053_v13  ;;  %v312_v37 = vmax.f32 %v309_v34, 0.0  ;;  %v1041_v62 = vld [vmem:[#allocation8 + $0x40] sm:$0xff]  ;;  %v1071_v2 = vld [vmem:[#allocation8 + $0x130] sm:$0xff]  ;;  %v1070_v5 = vld [vmem:[#allocation8 + $0x128] sm:$0xff] }
  0x49   : > { %711 = vmatpush.bf16.msra.mxu3 %v1061_v14  ;;  %v313_v42 = vpack.c.bf16 %v310_v35, %v310_v35  ;;  %v314_v43 = vpack.c.bf16 %v311_v36, %v311_v36  ;;  %v1069_v6 = vld [vmem:[#allocation8 + $0x120] sm:$0xff]  ;;  %v1068_v7 = vld [vmem:[#allocation8 + $0x118] sm:$0xff]  ;;  %v1067_v8 = vld [vmem:[#allocation8 + $0x110] sm:$0xff] }
  0x4a   : > { %683 = vmatpush.bf16.msra.mxu1 %v1045_v15  ;;  %v315_v44 = vpack.c.bf16 %v312_v37, %v312_v37  ;;  %v1066_v9 = vld [vmem:[#allocation8 + $0x108] sm:$0xff]  ;;  %v1065_v10 = vld [vmem:[#allocation8 + $0x100] sm:$0xff] }
  0x4b   : > { %670 = vmatpush.bf16.msra.mxu0 %v1036_v28  ;;  %v318_v45 = vunpack.c.l.b16 %v313_v42  ;;  %v319_v46 = vunpack.c.l.b16 %v314_v43  ;;  %v1160_v13 = vld [vmem:[%s1576_s4] ss:$0 sm:$0xff] }
  0x4c   : > { %698 = vmatpush.bf16.msra.mxu2 %v1052_v29  ;;  %v323_v47 = vunpack.c.l.b16 %v315_v44 }
  0x4d   : > { %712 = vmatpush.bf16.msra.mxu3 %v1060_v30  ;;  %v320_v52 = vpack.c.b16 %v319_v46, %v318_v45 }
  0x4e   : > { %684 = vmatpush.bf16.msra.mxu1 %v1044_v31  ;;  %v324_v53 = vpack.c.b16 %v323_v47, %v323_v47  ;;  %v340_v11 = vpack.c.b16 %v323_v47, %v319_v46 }
  0x4f   : > { %671 = vmatpush.bf16.msra.mxu0 %v1035_v38  ;;  %v331_v56 = vrot.slane %v320_v52, 2  ;;  %v336_v60 = vrot.slane %v320_v52, 3  ;;  %v326_v63 = vrot.slane %v320_v52, 1 }
  0x50   : > { %699 = vmatpush.bf16.msra.mxu2 %v1051_v39  ;;  %v332_v57 = vrot.slane %v324_v53, 2  ;;  %v337_v61 = vrot.slane %v324_v53, 3  ;;  %v327_v0 = vrot.slane %v324_v53, 1 }
  0x51   : > { %713 = vmatpush.bf16.msra.mxu3 %v1059_v40 }
  0x52   : > { %685 = vmatpush.bf16.msra.mxu1 %v1043_v41  ;;  %v333_v1 = vsel %vm330_vm0, %v331_v56, %v332_v57  ;;  %v338_v3 = vsel %vm335_vm1, %v336_v60, %v337_v61  ;;  %v328_v4 = vsel %vm325_vm2, %v326_v63, %v327_v0 }
  0x53   : > { %672 = vmatpush.bf16.msra.mxu0 %v1034_v48 }
  0x54   : > { %700 = vmatpush.bf16.msra.mxu2 %v1050_v49 }
  0x55   : > { %714 = vmatpush.bf16.msra.mxu3 %v1058_v50 }
  0x56   : > { %686 = vmatpush.bf16.msra.mxu1 %v1042_v51 }
  0x57   : > { %673 = vmatpush.bf16.msra.mxu0 %v1033_v54 }
  0x58   : > { %701 = vmatpush.bf16.msra.mxu2 %v1049_v55 }
  0x59   : > { %715 = vmatpush.bf16.msra.mxu3 %v1057_v59 }
  0x5a   : > { %687 = vmatpush.bf16.msra.mxu1 %v1041_v62  ;;  %674 = vmatmul.bf16.vlgmr.msra.gmra.mxu0 %v320_v52 }
  0x5b   : > { %722 = vmatpush.bf16.msrb.mxu0 %v1072_v58  ;;  %702 = vmatmul.bf16.vlgmr.msra.gmra.mxu2 %v333_v1 }
  0x5c   : > { %716 = vmatmul.bf16.vlgmr.msra.gmra.mxu3 %v338_v3 }
  0x5d   : > { %688 = vmatmul.bf16.vlgmr.msra.gmra.mxu1 %v328_v4 }
  0x5f   : > { %723 = vmatpush.bf16.msrb.mxu0 %v1071_v2 }
  0x63   : > { %724 = vmatpush.bf16.msrb.mxu0 %v1070_v5 }
  0x67   : > { %725 = vmatpush.bf16.msrb.mxu0 %v1069_v6 }
  0x6b   : > { %726 = vmatpush.bf16.msrb.mxu0 %v1068_v7 }
  0x6f   : > { %727 = vmatpush.bf16.msrb.mxu0 %v1067_v8 }
  0x73   : > { %728 = vmatpush.bf16.msrb.mxu0 %v1066_v9 }
  0x77   : > { %729 = vmatpush.bf16.msrb.mxu0 %v1065_v10 }
  0x7a   : > { %730 = vmatmul.bf16.vlgmr.msrb.gmra.mxu0 %v340_v11 }
  0xd7   : > { %v675_v12 = vpop.f32.mrf.mxu0 }
  0xd8   : > { %v676_v15 = vadd.f32 %v1160_v13, %v675_v12 }
  0xda   : > { %v689_v14 = vpop.f32.mrf.mxu1 }
  0xdb   : > { %v690_v17 = vadd.f32 %v689_v14, %v676_v15 }
  0xde   : > { %v703_v16 = vpop.f32.mrf.mxu2 }
  0xdf   : > { %v677_v18 = vpop.f32.mrf.mxu0  ;;  %v717_v19 = vpop.f32.mrf.mxu3  ;;  %v704_v20 = vadd.f32 %v703_v16, %v690_v17 }
  0xe0   : > { %v678_v21 = vadd.f32 %v1160_v13, %v677_v18 }
  0xe1   : > { %v718_v23 = vadd.f32 %v717_v19, %v704_v20 }
  0xe2   : > { %v691_v22 = vpop.f32.mrf.mxu1 }
  0xe3   : > { %v692_v24 = vadd.f32 %v691_v22, %v678_v21 }
  0xe6   : > { %v705_v25 = vpop.f32.mrf.mxu2 }
  0xe7   : > { %v706_v28 = vadd.f32 %v705_v25, %v692_v24  ;;  %v719_v29 = vpop.f32.mrf.mxu3 }
  0xe9   : > { %v720_v30 = vadd.f32 %v719_v29, %v706_v28 }
  0xf7   : > { %v731_v26 = vpop.f32.mrf.mxu0 }
  0xf8   : > { %v732_v27 = vadd.f32 %v731_v26, %v718_v23 }
  0xfa   : > { %736 = vst [vmem:[%s294_s8] sm:$0xff] %v732_v27 }
  0xff   : > { %v733_v31 = vpop.f32.mrf.mxu0 }
 0x100   : > { %v734_v32 = vadd.f32 %v733_v31, %v720_v30 }
 0x102   : > { %737 = vst [vmem:[%s294_s8 + $0x8] sm:$0xff] %v734_v32 }
 0x103   : > { %1308 = shalt.err (!%p1305_p10)
}
 0x104   : > { %s1364_s17 = smov 128   ;;  %s1365_s29 = smov 8  }
 0x105   : > { %1091 = dma.vmem_to_hbm [thread:$0]  (%p1485_p7), %s752_s7, 256, %s754_s15, %s739_s22, %s1364_s17, %s1364_s17, %s1365_s29  }
 0x106 PF: > { %s768_s23 = sand.u32 1, %s1343_s18   ;;  %p1590_p12 = scmp.ge.s32.totalorder %s1355_s21, 2 }
 0x107   : > { %s769_s26 = scalar_lea.sflag [#allocation4], %s768_s23 }
 0x108   : > { %p1108_p13 = pnand %p1590_p12, %p1431_p6 }
 0x10a   : > { %p1109_p0 = pneg %p1108_p13 }
 0x10c   : > { %1338 = dma.done.wait (%p1109_p0), %s769_s26, 256  }
 0x10d   : > { %1340 = vsyncadd (%p1109_p0), %s769_s26, 4294967040  ;;  %p20_p3 = scmp.ge.s32.totalorder %s1471_s30, 4   ;;  %s1591_s18 = smov %s1347_s19 }
 0x10e   : > { %s1592_s19 = smov %s1351_s20  ;;  %s1593_s20 = smov %s1481_s9 }
 0x10f   : > { %s1594_s21 = smov %s1471_s30  ;;  %22 = sbr.rel (!%p20_p3) target bundleno = 9 (0x9), region = 97 }
 0x114   :  { %775 = vsyncpa [#allocation3], 1 }
 0x115   :  { %777 = vsyncpa [#allocation3 + $0x1], 1 }
 0x116   :  { %778 = vsyncpa [#allocation6], 1 }
 0x117   :  { %779 = vsyncpa [#allocation9], 1 }
 0x118   :  { %780 = vsyncpa [#allocation4], 1 }
 0x119   :  { %782 = vsyncpa [#allocation4 + $0x1], 1 }

</bundles_post_ra>
